<compile_context>
chip_gen: v7x
topology: tpu7x:2x2x1
jax: 0.10.0
libtpu: 0.0.40
codegen_flags: <defaults>
</compile_context>

<pallas_src>
import functools

import jax
import jax.numpy as jnp
from jax import lax
from jax.experimental import pallas as pl
from jax.experimental.pallas import tpu as pltpu


def _cdiv(a, b):
    return -(-a // b)


def _round_up(x, m):
    return (x + m - 1) // m * m


def _accuracy_kernel(temp_ref, text_ref, audio_ref, out_ref,
                     best_val_ref, best_idx_ref, *, n_total):
    # temp_ref:      SMEM (1,)        f32  -- text_temperature
    # text_ref:      VMEM (TN, D)          -- text_features tile (cols of logits)
    # audio_ref:     VMEM (TM, D)          -- mlp_audio_features tile (rows)
    # out_ref:       VMEM (1, 8, 128) f32  -- per-audio-tile correct count (bcast)
    # best_val_ref:  VMEM (TM, 1)     f32  -- running row max across text tiles
    # best_idx_ref:  VMEM (TM, 1)     i32  -- running argmax (global column)
    i = pl.program_id(0)            # audio-row tile index (parallel)
    j = pl.program_id(1)            # text-col tile index (reduction, innermost)
    tm = audio_ref.shape[0]
    tn = text_ref.shape[0]

    @pl.when(j == 0)
    def _init():
        best_val_ref[...] = jnp.full(best_val_ref.shape, -jnp.inf, jnp.float32)
        best_idx_ref[...] = jnp.full(best_idx_ref.shape, -1, jnp.int32)

    # Temperature on the (TM, D) audio tile, not the (TM, TN) logits tile.
    temp = temp_ref[0]
    a = audio_ref[...] * temp.astype(audio_ref.dtype)

    # (TM, TN) logits tile: contract feature axis of both operands directly
    # (no explicit transpose), f32 MXU accumulation.
    logits = lax.dot_general(
        a, text_ref[...],
        dimension_numbers=(((1,), (1,)), ((), ())),
        preferred_element_type=jnp.float32)

    # Global column indices for this text tile; mask padded columns.
    col = lax.broadcasted_iota(jnp.int32, logits.shape, 1) + j * tn
    logits = jnp.where(col < n_total, logits, -jnp.inf)

    # Per-row max and first-maximal column index inside the tile.
    tile_max = jnp.max(logits, axis=-1, keepdims=True)                 # (TM, 1)
    tile_arg = jnp.min(jnp.where(logits == tile_max, col, n_total),
                       axis=-1, keepdims=True)                         # (TM, 1)

    # Online argmax across text tiles.  Strict '>' keeps the lowest-index
    # column on cross-tile ties (text tiles are visited in increasing column
    # order), matching torch/jnp first-maximal-index argmax.
    better = tile_max > best_val_ref[...]
    best_idx_ref[...] = jnp.where(better, tile_arg, best_idx_ref[...])
    best_val_ref[...] = jnp.where(better, tile_max, best_val_ref[...])

    @pl.when(j == pl.num_programs(1) - 1)
    def _finalize():
        rows = lax.broadcasted_iota(jnp.int32, (tm, 1), 0) + i * tm     # labels
        valid = rows < n_total                                          # padded rows
        correct = jnp.logical_and(best_idx_ref[...] == rows, valid)
        cnt = jnp.sum(correct.astype(jnp.float32))
        out_ref[...] = jnp.full(out_ref.shape, cnt, jnp.float32)


def clap_accuracy(text_features,
                  audio_features=None,
                  text_temperature: float = 1.0,
                  audio_temperature: float = 1.0,
                  mlp_text_features=None,
                  mlp_audio_features=None,
                  *,
                  tm: int = None,
                  tn: int = None):
    """Mirror of Accuracy.forward.  audio_features / mlp_text_features /
    audio_temperature are accepted for signature parity but (as in the PyTorch
    module) do not affect the returned value."""
    n, d = text_features.shape
    assert mlp_audio_features.shape == (n, d)

    # Tile sizes: row tiles are 8-aligned, column tiles 128-aligned (MXU/lane
    # friendly); capped so double-buffered tiles stay well inside scoped VMEM
    # on every generation (v5e 16 MiB default, v7x 64 MiB physical).
    if tm is None:
        tm = min(256, _round_up(n, 8))
    if tn is None:
        tn = min(512, _round_up(n, 128))
    gi = _cdiv(n, tm)
    gj = _cdiv(n, tn)

    temp = jnp.asarray([text_temperature], dtype=jnp.float32)

    partials = pl.pallas_call(
        functools.partial(_accuracy_kernel, n_total=n),
        grid=(gi, gj),
        in_specs=[
            pl.BlockSpec(memory_space=pltpu.SMEM),           # temperature scalar
            pl.BlockSpec((tn, d), lambda i, j: (j, 0)),      # text tile (cols)
            pl.BlockSpec((tm, d), lambda i, j: (i, 0)),      # mlp-audio tile (rows)
        ],
        out_specs=pl.BlockSpec((1, 8, 128), lambda i, j: (i, 0, 0)),
        out_shape=jax.ShapeDtypeStruct((gi, 8, 128), jnp.float32),
        scratch_shapes=[
            pltpu.VMEM((tm, 1), jnp.float32),   # running best value per row
            pltpu.VMEM((tm, 1), jnp.int32),     # running best (global) column
        ],
        compiler_params=pltpu.CompilerParams(
            dimension_semantics=("parallel", "arbitrary")),
    )(temp, text_features, mlp_audio_features)

    # Tiny final reduction over per-audio-tile partial counts.
    return jnp.sum(partials[:, 0, 0]) * (1.0 / n)


def _reference(text_features, mlp_audio_features, text_temperature=1.0):
    logits = text_temperature * (mlp_audio_features @ text_features.T)
    preds = jnp.argmax(logits, axis=-1)
    labels = jnp.arange(logits.shape[0])
    return jnp.mean((preds == labels).astype(jnp.float32))


if __name__ == "__main__":
    key = jax.random.PRNGKey(0)
    k1, k2, k3, k4 = jax.random.split(key, 4)

    # Case 1: small batch, single tile (exercises column padding 16 -> 128).
    N, D = 16, 32
    text_features = jax.random.normal(k1, (N, D), jnp.float32)
    audio_features = jax.random.normal(k2, (N, D), jnp.float32)
    mlp_text_features = jax.random.normal(k3, (N, D), jnp.float32)
    mlp_audio_features = jax.random.normal(k4, (N, D), jnp.float32)

    acc = clap_accuracy(text_features, audio_features,
                        text_temperature=1.0, audio_temperature=1.0,
                        mlp_text_features=mlp_text_features,
                        mlp_audio_features=mlp_audio_features)
    acc = jax.block_until_ready(acc)
    ref = _reference(text_features, mlp_audio_features, 1.0)
    assert jnp.allclose(acc, ref), (acc, ref)

    # Case 2: multi-tile grid (3 x 2) with row and column padding, non-unit
    # temperature — exercises the online argmax across text tiles.
    N2, D2 = 160, 64
    ka, kb = jax.random.split(k1)
    text2 = jax.random.normal(ka, (N2, D2), jnp.float32)
    mlp_audio2 = jax.random.normal(kb, (N2, D2), jnp.float32)
    acc2 = clap_accuracy(text2, text2,
                         text_temperature=0.5, audio_temperature=1.0,
                         mlp_text_features=text2,
                         mlp_audio_features=mlp_audio2,
                         tm=64, tn=128)
    acc2 = jax.block_until_ready(acc2)
    ref2 = _reference(text2, mlp_audio2, 0.5)
    assert jnp.allclose(acc2, ref2), (acc2, ref2)

    print("KERNEL_OK")
</pallas_src>

<mosaic_0001>
module attributes {stable_mosaic.version = 11 : i64} {
  func.func @_accuracy_kernel(%arg0: i32, %arg1: i32, %arg2: memref<1xf32, #tpu.memory_space<smem>>, %arg3: memref<128x32xf32, #tpu.memory_space<vmem>>, %arg4: memref<16x32xf32, #tpu.memory_space<vmem>>, %arg5: memref<1x8x128xf32, #tpu.memory_space<vmem>>, %arg6: memref<16x1xf32, #tpu.memory_space<vmem>>, %arg7: memref<16x1xi32, #tpu.memory_space<vmem>>) attributes {dimension_semantics = [#tpu.dimension_semantics<parallel>, #tpu.dimension_semantics<arbitrary>], iteration_bounds = array<i64: 1, 1>, scalar_prefetch = 0 : i64, scratch_operands = 2 : i64, tpu.core_type = #tpu.core_type<tc>, window_params = [{transform_indices = @transform_0, window_bounds = array<i64: 1>}, {transform_indices = @transform_1, window_bounds = array<i64: 128, 32>}, {transform_indices = @transform_2, window_bounds = array<i64: 16, 32>}, {transform_indices = @transform_3, window_bounds = array<i64: 1, 8, 128>}]} {
    %c0_i32 = arith.constant 0 : i32
    %0 = arith.cmpi eq, %arg1, %c0_i32 : i32
    %1 = arith.extui %0 : i1 to i32
    %c0_i32_0 = arith.constant 0 : i32
    %2 = arith.cmpi ne, %1, %c0_i32_0 : i32
    scf.if %2 {
      %cst_21 = arith.constant 0xFF800000 : f32
      %36 = vector.broadcast %cst_21 : f32 to vector<16x1xf32>
      %c0_22 = arith.constant 0 : index
      %c0_23 = arith.constant 0 : index
      %37 = vector.load %arg6[%c0_22, %c0_23] : memref<16x1xf32, #tpu.memory_space<vmem>>, vector<16x1xf32>
      tpu.vector_store %arg6[%c0_22, %c0_23], %36 {strides = array<i32>} : memref<16x1xf32, #tpu.memory_space<vmem>>, vector<16x1xf32>,
      %c-1_i32 = arith.constant -1 : i32
      %38 = vector.broadcast %c-1_i32 : i32 to vector<16x1xi32>
      %c0_24 = arith.constant 0 : index
      %c0_25 = arith.constant 0 : index
      %39 = vector.load %arg7[%c0_24, %c0_25] : memref<16x1xi32, #tpu.memory_space<vmem>>, vector<16x1xi32>
      tpu.vector_store %arg7[%c0_24, %c0_25], %38 {strides = array<i32>} : memref<16x1xi32, #tpu.memory_space<vmem>>, vector<16x1xi32>,
    } else {
    }
    %c0 = arith.constant 0 : index
    %3 = memref.load %arg2[%c0] : memref<1xf32, #tpu.memory_space<smem>>
    %c0_1 = arith.constant 0 : index
    %c0_2 = arith.constant 0 : index
    %4 = vector.load %arg4[%c0_1, %c0_2] : memref<16x32xf32, #tpu.memory_space<vmem>>, vector<16x32xf32>
    %5 = vector.broadcast %3 : f32 to vector<16x32xf32>
    %6 = arith.mulf %4, %5 : vector<16x32xf32>
    %c0_3 = arith.constant 0 : index
    %c0_4 = arith.constant 0 : index
    %7 = vector.load %arg3[%c0_3, %c0_4] : memref<128x32xf32, #tpu.memory_space<vmem>>, vector<128x32xf32>
    %cst = arith.constant dense<0.000000e+00> : vector<16x128xf32>
    %8 = tpu.matmul %6, %7, %cst {dimension_numbers = #tpu.dot_dimension_numbers<[1], [1], [0], [0], [0, 0, 1, 0], [], []>} : vector<16x32xf32>, vector<128x32xf32>, vector<16x128xf32> -> vector<16x128xf32>
    %9 = tpu.iota {dimensions = array<i32: 1>} : vector<16x128xi32>
    %c128_i32 = arith.constant 128 : i32
    %10 = arith.muli %arg1, %c128_i32 : i32
    %11 = vector.broadcast %10 : i32 to vector<16x128xi32>
    %12 = arith.addi %9, %11 : vector<16x128xi32>
    %c16_i32 = arith.constant 16 : i32
    %13 = vector.broadcast %c16_i32 : i32 to vector<16x128xi32>
    %14 = arith.cmpi slt, %12, %13 : vector<16x128xi32>
    %cst_5 = arith.constant 0xFF800000 : f32
    %15 = vector.broadcast %cst_5 : f32 to vector<16x128xf32>
    %16 = arith.select %14, %8, %15 : vector<16x128xi1>, vector<16x128xf32>
    %cst_6 = arith.constant dense<0xFF800000> : vector<16xf32>
    %17 = vector.multi_reduction <maximumf>, %16, %cst_6 [1] : vector<16x128xf32> to vector<16xf32>
    %18 = vector.shape_cast %17 : vector<16xf32> to vector<16x1xf32>
    %19 = vector.broadcast %18 : vector<16x1xf32> to vector<16x128xf32>
    %20 = arith.cmpf oeq, %16, %19 : vector<16x128xf32>
    %c16_i32_7 = arith.constant 16 : i32
    %21 = vector.broadcast %c16_i32_7 : i32 to vector<16x128xi32>
    %22 = arith.select %20, %12, %21 : vector<16x128xi1>, vector<16x128xi32>
    %cst_8 = arith.constant dense<2147483647> : vector<16xi32>
    %23 = vector.multi_reduction <minsi>, %22, %cst_8 [1] : vector<16x128xi32> to vector<16xi32>
    %24 = vector.shape_cast %23 : vector<16xi32> to vector<16x1xi32>
    %c0_9 = arith.constant 0 : index
    %c0_10 = arith.constant 0 : index
    %25 = vector.load %arg6[%c0_9, %c0_10] : memref<16x1xf32, #tpu.memory_space<vmem>>, vector<16x1xf32>
    %26 = arith.cmpf ogt, %18, %25 : vector<16x1xf32>
    %c0_11 = arith.constant 0 : index
    %c0_12 = arith.constant 0 : index
    %27 = vector.load %arg7[%c0_11, %c0_12] : memref<16x1xi32, #tpu.memory_space<vmem>>, vector<16x1xi32>
    %28 = arith.select %26, %24, %27 : vector<16x1xi1>, vector<16x1xi32>
    %c0_13 = arith.constant 0 : index
    %c0_14 = arith.constant 0 : index
    %29 = vector.load %arg7[%c0_13, %c0_14] : memref<16x1xi32, #tpu.memory_space<vmem>>, vector<16x1xi32>
    tpu.vector_store %arg7[%c0_13, %c0_14], %28 {strides = array<i32>} : memref<16x1xi32, #tpu.memory_space<vmem>>, vector<16x1xi32>,
    %c0_15 = arith.constant 0 : index
    %c0_16 = arith.constant 0 : index
    %30 = vector.load %arg6[%c0_15, %c0_16] : memref<16x1xf32, #tpu.memory_space<vmem>>, vector<16x1xf32>
    %31 = arith.select %26, %18, %30 : vector<16x1xi1>, vector<16x1xf32>
    %c0_17 = arith.constant 0 : index
    %c0_18 = arith.constant 0 : index
    %32 = vector.load %arg6[%c0_17, %c0_18] : memref<16x1xf32, #tpu.memory_space<vmem>>, vector<16x1xf32>
    tpu.vector_store %arg6[%c0_17, %c0_18], %31 {strides = array<i32>} : memref<16x1xf32, #tpu.memory_space<vmem>>, vector<16x1xf32>,
    %c0_i32_19 = arith.constant 0 : i32
    %33 = arith.cmpi eq, %arg1, %c0_i32_19 : i32
    %34 = arith.extui %33 : i1 to i32
    %c0_i32_20 = arith.constant 0 : i32
    %35 = arith.cmpi ne, %34, %c0_i32_20 : i32
    scf.if %35 {
      %36 = tpu.iota {dimensions = array<i32: 0>} : vector<16x1xi32>
      %c16_i32_21 = arith.constant 16 : i32
      %37 = arith.muli %arg0, %c16_i32_21 : i32
      %38 = vector.broadcast %37 : i32 to vector<16x1xi32>
      %39 = arith.addi %36, %38 : vector<16x1xi32>
      %c16_i32_22 = arith.constant 16 : i32
      %40 = vector.broadcast %c16_i32_22 : i32 to vector<16x1xi32>
      %41 = arith.cmpi slt, %39, %40 : vector<16x1xi32>
      %c0_23 = arith.constant 0 : index
      %c0_24 = arith.constant 0 : index
      %42 = vector.load %arg7[%c0_23, %c0_24] : memref<16x1xi32, #tpu.memory_space<vmem>>, vector<16x1xi32>
      %43 = arith.cmpi eq, %42, %39 : vector<16x1xi32>
      %44 = arith.andi %43, %41 : vector<16x1xi1>
      %45 = arith.extui %44 : vector<16x1xi1> to vector<16x1xi32>
      %46 = arith.sitofp %45 : vector<16x1xi32> to vector<16x1xf32>
      %47 = vector.shape_cast %46 : vector<16x1xf32> to vector<1x16x1xf32>
      %cst_25 = arith.constant dense<0.000000e+00> : vector<1xf32>
      %48 = vector.multi_reduction <add>, %47, %cst_25 [1, 2] : vector<1x16x1xf32> to vector<1xf32>
      %49 = vector.shape_cast %48 : vector<1xf32> to vector<1x1x1xf32>
      %50 = vector.extract %49[0, 0, 0] : f32 from vector<1x1x1xf32>
      %51 = vector.broadcast %50 : f32 to vector<1x8x128xf32>
      %c0_26 = arith.constant 0 : index
      %c0_27 = arith.constant 0 : index
      %c0_28 = arith.constant 0 : index
      %52 = vector.load %arg5[%c0_26, %c0_27, %c0_28] : memref<1x8x128xf32, #tpu.memory_space<vmem>>, vector<1x8x128xf32>
      tpu.vector_store %arg5[%c0_26, %c0_27, %c0_28], %51 {strides = array<i32>} : memref<1x8x128xf32, #tpu.memory_space<vmem>>, vector<1x8x128xf32>,
    } else {
    }
    return
  }
  func.func @transform_0(%arg0: i32, %arg1: i32) -> i32 {
    %c0_i32 = arith.constant 0 : i32
    %c0_i32_0 = arith.constant 0 : i32
    return %c0_i32 : i32
  }
  func.func @transform_1(%arg0: i32, %arg1: i32) -> (i32, i32) {
    %c0_i32 = arith.constant 0 : i32
    %c0_i32_0 = arith.constant 0 : i32
    return %arg1, %c0_i32 : i32, i32
  }
  func.func @transform_2(%arg0: i32, %arg1: i32) -> (i32, i32) {
    %c0_i32 = arith.constant 0 : i32
    %c0_i32_0 = arith.constant 0 : i32
    return %arg0, %c0_i32 : i32, i32
  }
  func.func @transform_3(%arg0: i32, %arg1: i32) -> (i32, i32, i32) {
    %c0_i32 = arith.constant 0 : i32
    %c0_i32_0 = arith.constant 0 : i32
    %c0_i32_1 = arith.constant 0 : i32
    return %arg0, %c0_i32, %c0_i32_0 : i32, i32, i32
  }
}

</mosaic_0001>

<bundles_post_ra>
// kernel: tpu_custom_call.1
= control target key start
LH: loop header
LB: loop body
LE: loop exit
PB: predicated region body
PF: predicated region fallthrough
CT: control target
= control target key end

     0   :  { %9 = vsyncpa [#allocation6], 0  ;;  %s642_s0 = inlined_call_operand.<no memory space> [shape: f32[1], index: 0, kind: input, shape index: {}]   ;;  %s643_s1 = inlined_call_operand.hbm [shape: f32[16,32], index: 1, kind: input, shape index: {}]   ;;  %s644_s2 = inlined_call_operand.hbm [shape: f32[16,32], index: 2, kind: input, shape index: {}]   ;;  %s645_s3 = inlined_call_operand.hbm [shape: f32[1,8,128], index: 3, kind: output, shape index: {}]  }
   0x1   :  { %10 = vsyncpa [#allocation9], 0 }
   0x2   :  { %11 = vsyncpa [#allocation7], 0 }
   0x3   :  { %18 = vsyncadd [#allocation6], 1792  ;;  %s521_s12 = smov [#allocation5]   ;;  %s449_s16 = scalar_lea.hbm %s643_s1, 256 }
   0x4   :  { %s19_s13 = sshll.u32 %s521_s12, 4  ;;  %p450_p0 = scmp.ne.s32.totalorder %s643_s1, %s449_s16  ;;  %s20_s13 = int_to_ptr.vmem [resolvable:$true] %s19_s13 }
   0x5   :  { %p453_p1 = scmp.lt.u32.totalorder %s449_s16, %s643_s1 }
   0x7   :  { %p455_p2 = pnand %p453_p1, %p450_p0 }
   0x9   :  { %458 = shalt.err (!%p455_p2)
}
   0xa   :  { %s459_s21 = scalar_lea.vmem %s20_s13, 256  ;;  %s463_s22 = scalar_lea.vmem %s20_s13, 2048 }
   0xb   :  { %p460_p3 = scmp.ne.s32.totalorder %s20_s13, %s459_s21  ;;  %p464_p4 = scmp.lt.s32.totalorder %s20_s13, %s20_s13 }
   0xc   :  { %p465_p5 = scmp.lt.s32.totalorder %s463_s22, %s459_s21 }
   0xe   :  { %p466_p6 = por %p465_p5, %p464_p4 }
  0x10   :  { %p467_p7 = pnand %p466_p6, %p460_p3 }
  0x12   :  { %470 = shalt.err (!%p467_p7)
}
  0x13   :  { %s522_s23 = smov 128   ;;  %s523_s24 = smov 8  }
  0x14   :  { %25 = dma.hbm_to_vmem [thread:$0]  %s643_s1, 256, %s20_s13, [#allocation6], %s522_s23, %s522_s23, %s523_s24  }
  0x15   :  { %s524_s27 = smov [#allocation8]   ;;  %s471_s4 = scalar_lea.hbm %s644_s2, 256 }
  0x16   :  { %s31_s28 = sshll.u32 %s524_s27, 4  ;;  %p472_p8 = scmp.ne.s32.totalorder %s644_s2, %s471_s4  ;;  %s32_s28 = int_to_ptr.vmem [resolvable:$true] %s31_s28 }
  0x17   :  { %p475_p9 = scmp.lt.u32.totalorder %s471_s4, %s644_s2 }
  0x19   :  { %p477_p10 = pnand %p475_p9, %p472_p8 }
  0x1b   :  { %480 = shalt.err (!%p477_p10)
}
  0x1c   :  { %s481_s9 = scalar_lea.vmem %s32_s28, 256  ;;  %p486_p12 = scmp.lt.s32.totalorder %s32_s28, %s32_s28 }
  0x1d   :  { %p482_p11 = scmp.ne.s32.totalorder %s32_s28, %s481_s9  ;;  %p487_p13 = scmp.lt.s32.totalorder %s481_s9, %s481_s9 }
  0x1f   :  { %p488_p0 = por %p487_p13, %p486_p12 }
  0x21   :  { %p489_p1 = pnand %p488_p0, %p482_p11 }
  0x23   :  { %492 = shalt.err (!%p489_p1)
}
  0x24   :  { %37 = dma.hbm_to_vmem [thread:$0]  %s644_s2, 256, %s32_s28, [#allocation9], %s522_s23, %s522_s23, %s523_s24  }
  0x25   :  { %515 = dma.done.wait [#allocation6], 2048  }
  0x26   :  { %516 = vsyncadd [#allocation6], 4294965248 }
  0x27   :  { %517 = dma.done.wait [#allocation9], 256  }
  0x28   :  { %518 = vsyncadd [#allocation9], 4294967040  ;;  %vm75_vm0 = vcmask 261120   ;;  %v59_v1 = vld [vmem:[#allocation5] sm:$0xff]  ;;  %v60_v2 = vld [vmem:[#allocation5 + $0x8] sm:$0xff]  ;;  %v56_v7 = vstv %s642_s0  ;;  %vm48_vm2 = vcmask 7168   ;;  %v205_v31 = vlaneseq }
  0x29   :  { %vm575_vm1 = vmpackc.low %vm75_vm0, %vm75_vm0  ;;  %v61_v3 = vld [vmem:[#allocation5 + $0x10] sm:$0xff]  ;;  %v391_v4 = vpack.c.bf16 %v60_v2, %v59_v1  ;;  %v62_v5 = vld [vmem:[#allocation5 + $0x18] sm:$0xff]  ;;  %v525_v30 = vmov -inf   ;;  %v526_v49 = vmov 4294967295   ;;  %s528_s0 = smov [#allocation10]  }
  0x2a   :  { %v397_v6 = vpack.c.bf16 %v62_v5, %v61_v3  ;;  %v54_v8 = vld [vmem:[#allocation8] sm:$0xff]  ;;  %v64_v10 = vld [vmem:[#allocation5 + $0x28] sm:$0xff]  ;;  %v65_v13 = vld [vmem:[#allocation5 + $0x30] sm:$0xff]  ;;  %49 = vst.msk [vmem:[#allocation2] sm:$0xff] %vm48_vm2, %v525_v30  ;;  %v206_v32 = vand.u32 127, %v205_v31  ;;  %s308_s12 = sshll.u32 %s528_s0, 4  ;;  %s309_s12 = int_to_ptr.vmem [resolvable:$true] %s308_s12 }
  0x2b   :  { %393 = vmatprep.subr.msk.bf16.mxu0 %vm575_vm1, %v391_v4  ;;  %v63_v9 = vld [vmem:[#allocation5 + $0x20] sm:$0xff]  ;;  %v57_v11 = vmul.f32 %v56_v7, %v54_v8  ;;  %v66_v14 = vld [vmem:[#allocation5 + $0x38] sm:$0xff]  ;;  %v68_v17 = vld [vmem:[#allocation5 + $0x48] sm:$0xff]  ;;  %50 = vst.msk [vmem:[#allocation2 + $0x8] sm:$0xff] %vm48_vm2, %v525_v30  ;;  %v270_v8 = vshrl.u32 %v205_v31, 7  ;;  %s493_s14 = scalar_lea.vmem %s309_s12, 128  ;;  %p498_p3 = scmp.lt.s32.totalorder %s309_s12, %s309_s12 }
  0x2c   :  { %396 = vmatpush3.bf16.xpose.msk.msra.mxu0 %vm575_vm1, %v391_v4  ;;  %v403_v12 = vpack.c.bf16 %v64_v10, %v63_v9  ;;  %v409_v15 = vpack.c.bf16 %v66_v14, %v65_v13  ;;  %v67_v16 = vld [vmem:[#allocation5 + $0x40] sm:$0xff]  ;;  %v69_v19 = vld [vmem:[#allocation5 + $0x50] sm:$0xff]  ;;  %v70_v20 = vld [vmem:[#allocation5 + $0x58] sm:$0xff]  ;;  %vm210_vm3 = vcmp.lt.s32.totalorder %v206_v32, 16  ;;  %51 = vst.msk [vmem:[#allocation3] sm:$0xff] %vm48_vm2, %v526_v49  ;;  %p494_p2 = scmp.ne.s32.totalorder %s309_s12, %s493_s14  ;;  %p499_p4 = scmp.lt.s32.totalorder %s493_s14, %s493_s14 }
  0x2d   :  { %399 = vmatprep.subr.msk.bf16.mxu0 %vm575_vm1, %v397_v6  ;;  %388 = vmatprep.mubr.msk.f32.mxu0 %vm75_vm0, %v57_v11  ;;  %v415_v18 = vpack.c.bf16 %v68_v17, %v67_v16  ;;  %v421_v21 = vpack.c.bf16 %v70_v20, %v69_v19  ;;  %v71_v22 = vld [vmem:[#allocation5 + $0x60] sm:$0xff]  ;;  %v72_v23 = vld [vmem:[#allocation5 + $0x68] sm:$0xff]  ;;  %v73_v25 = vld [vmem:[#allocation5 + $0x70] sm:$0xff]  ;;  %52 = vst.msk [vmem:[#allocation3 + $0x8] sm:$0xff] %vm48_vm2, %v526_v49  ;;  %v271_v10 = vadd.s32 8, %v270_v8 }
  0x2e   :  { %v427_v24 = vpack.c.bf16 %v72_v23, %v71_v22  ;;  %v74_v26 = vld [vmem:[#allocation5 + $0x78] sm:$0xff]  ;;  %v55_v28 = vld [vmem:[#allocation8 + $0x8] sm:$0xff]  ;;  %p500_p5 = por %p499_p4, %p498_p3 }
  0x2f   :  { %v433_v27 = vpack.c.bf16 %v74_v26, %v73_v25  ;;  %v58_v29 = vmul.f32 %v56_v7, %v55_v28 }
  0x30   :  { %p501_p6 = pnand %p500_p5, %p494_p2 }
  0x31   :  { %v249_v37 = vld [vmem:[#allocation2] sm:$0xff] }
  0x32   :  { %v250_v40 = vld [vmem:[#allocation2 + $0x8] sm:$0xff] }
  0x33   :  { %v253_v63 = vld [vmem:[#allocation3] sm:$0xff] }
  0x34   :  { %402 = vmatpush3.bf16.xpose.msk.msra.mxu0 %vm575_vm1, %v397_v6  ;;  %v254_v5 = vld [vmem:[#allocation3 + $0x8] sm:$0xff] }
  0x35   :  { %405 = vmatprep.subr.msk.bf16.mxu0 %vm575_vm1, %v403_v12 }
  0x3c   :  { %408 = vmatpush3.bf16.xpose.msk.msra.mxu0 %vm575_vm1, %v403_v12  ;;  %v527_v12 = vmov 0.0  }
  0x3d   :  { %411 = vmatprep.subr.msk.bf16.mxu0 %vm575_vm1, %v409_v15 }
  0x44   :  { %414 = vmatpush3.bf16.xpose.msk.msra.mxu0 %vm575_vm1, %v409_v15 }
  0x45   :  { %417 = vmatprep.subr.msk.bf16.mxu0 %vm575_vm1, %v415_v18 }
  0x4c   :  { %420 = vmatpush3.bf16.xpose.msk.msra.mxu0 %vm575_vm1, %v415_v18 }
  0x4d   :  { %423 = vmatprep.subr.msk.bf16.mxu0 %vm575_vm1, %v421_v21 }
  0x54   :  { %426 = vmatpush3.bf16.xpose.msk.msra.mxu0 %vm575_vm1, %v421_v21 }
  0x55   :  { %429 = vmatprep.subr.msk.bf16.mxu0 %vm575_vm1, %v427_v24 }
  0x5c   :  { %432 = vmatpush3.bf16.xpose.msk.msra.mxu0 %vm575_vm1, %v427_v24 }
  0x5d   :  { %435 = vmatprep.subr.msk.bf16.mxu0 %vm575_vm1, %v433_v27 }
  0x64   :  { %438 = vmatpush3.bf16.xpose.msk.msra.mxu0 %vm575_vm1, %v433_v27 }
  0x6b   :  { %389 = vmatmul.mubr.msk.f32.vlgmr.msra.gmra.mrb[0].mxu0 %vm75_vm0, %v58_v29 }
 0x13e   :  { %v390_v33 = vpop.f32.mrb[0].mxu0 }
 0x13f   :  { %v196_v34 = vpop.f32.mrb[1].mxu0  ;;  %v212_v36 = vsel %vm210_vm3, %v390_v33, -inf }
 0x140   :  { %v211_v35 = vsel %vm210_vm3, %v196_v34, -inf }
 0x141   :  { %213 = vmax.xlane.f32.xlu0 %v211_v35 }
 0x145   :  { %215 = vmax.xlane.f32.xlu0 %v212_v36 }
 0x1ce   :  { %v214_v38 = vpop.xlane.xlu0 %213 }
 0x1cf   :  { %vm217_vm4 = vcmp.eq.f32.partialorder %v211_v35, %v214_v38  ;;  %vm251_vm5 = vcmp.gt.f32.partialorder %v214_v38, %v249_v37 }
 0x1d0   :  { %v262_v39 = vsel %vm251_vm5, %v214_v38, %v249_v37  ;;  %v219_v41 = vsel %vm217_vm4, %v206_v32, 16 }
 0x1d1   :  { %264 = vst.msk [vmem:[#allocation2] sm:$0xff] %vm48_vm2, %v262_v39  ;;  %v222_v42 = vshra.s32 %v219_v41, 16  ;;  %v221_v50 = vand.u32 65535, %v219_v41 }
 0x1d2   :  { %v216_v43 = vpop.xlane.xlu0 %215 }
 0x1d3   :  { %vm218_vm6 = vcmp.eq.f32.partialorder %v212_v36, %v216_v43  ;;  %vm252_vm7 = vcmp.gt.f32.partialorder %v216_v43, %v250_v40  ;;  %v224_v44 = vcvt.s32.f32 %v222_v42  ;;  %v223_v52 = vcvt.s32.f32 %v221_v50 }
 0x1d4   :  { %v263_v45 = vsel %vm252_vm7, %v216_v43, %v250_v40  ;;  %v220_v46 = vsel %vm218_vm6, %v206_v32, 16 }
 0x1d5   :  { %265 = vst.msk [vmem:[#allocation2 + $0x8] sm:$0xff] %vm48_vm2, %v263_v45  ;;  %225 = vmin.xlane.f32.xlu1 %v224_v44  ;;  %v236_v47 = vshra.s32 %v220_v46, 16  ;;  %v235_v53 = vand.u32 65535, %v220_v46 }
 0x1d7   :  { %v238_v48 = vcvt.s32.f32 %v236_v47  ;;  %v237_v56 = vcvt.s32.f32 %v235_v53 }
 0x1d9   :  { %239 = vmin.xlane.f32.xlu1 %v238_v48 }
 0x262   :  { %v226_v51 = vpop.xlane.xlu1 %225 }
 0x263   :  { %vm227_vm8 = vcmp.eq.f32.partialorder %v224_v44, %v226_v51  ;;  %v232_v58 = vcvt.f32.s32 %v226_v51 }
 0x264   :  { %v228_v54 = vsel %vm227_vm8, %v223_v52, inf }
 0x265   :  { %229 = vmin.xlane.f32.xlu0 %v228_v54  ;;  %v233_v60 = vshll.u32 %v232_v58, 16 }
 0x266   :  { %v240_v55 = vpop.xlane.xlu1 %239 }
 0x267   :  { %vm241_vm9 = vcmp.eq.f32.partialorder %v238_v48, %v240_v55  ;;  %v246_v61 = vcvt.f32.s32 %v240_v55 }
 0x268   :  { %v242_v57 = vsel %vm241_vm9, %v237_v56, inf }
 0x269   :  { %243 = vmin.xlane.f32.xlu1 %v242_v57  ;;  %v247_v2 = vshll.u32 %v246_v61, 16 }
 0x2f2   :  { %v230_v59 = vpop.xlane.xlu0 %229 }
 0x2f3   :  { %v231_v62 = vcvt.f32.s32 %v230_v59 }
 0x2f5   :  { %v234_v0 = vadd.s32 %v233_v60, %v231_v62 }
 0x2f6   :  { %v244_v1 = vpop.xlane.xlu1 %243 }
 0x2f7   :  { %v255_v3 = vsel %vm251_vm5, %v234_v0, %v253_v63  ;;  %v245_v4 = vcvt.f32.s32 %v244_v1 }
 0x2f8   :  { %258 = vst.msk [vmem:[#allocation3] sm:$0xff] %vm48_vm2, %v255_v3 }
 0x2f9   :  { %v248_v6 = vadd.s32 %v247_v2, %v245_v4 }
 0x2fb   :  { %v256_v7 = vsel %vm252_vm7, %v248_v6, %v254_v5 }
 0x2fc   :  { %259 = vst.msk [vmem:[#allocation3 + $0x8] sm:$0xff] %vm48_vm2, %v256_v7 }
 0x2ff   :  { %v278_v9 = vld [vmem:[#allocation3] sm:$0xff] }
 0x300   :  { %vm280_vm10 = vcmp.eq.s32.totalorder %v278_v9, %v270_v8 }
 0x301   :  { %v336_v13 = vsel %vm280_vm10, 1.0, %v527_v12 }
 0x302   :  { %v288_v15 = vsel %vm48_vm2, %v336_v13, 0.0 }
 0x303   :  { %v279_v11 = vld [vmem:[#allocation3 + $0x8] sm:$0xff] }
 0x304   :  { %vm281_vm11 = vcmp.eq.s32.totalorder %v279_v11, %v271_v10 }
 0x305   :  { %v337_v14 = vsel %vm281_vm11, 1.0, %v527_v12 }
 0x306   :  { %v289_v16 = vsel %vm48_vm2, %v337_v14, 0.0 }
 0x307   :  { %v290_v17 = vadd.f32 %v289_v16, %v288_v15 }
 0x309   :  { %291 = vadd.xlane.f32.xlu0 %v290_v17 }
 0x396   :  { %v292_v18 = vpop.xlane.xlu0 %291 }
 0x397   :  { %v293_v19 = vrot.slane %v292_v18, 4 }
 0x399   :  { %v294_v20 = vadd.f32 %v293_v19, %v292_v18 }
 0x39b   :  { %v295_v21 = vrot.slane %v294_v20, 2 }
 0x39d   :  { %v296_v22 = vadd.f32 %v295_v21, %v294_v20 }
 0x39f   :  { %v297_v23 = vrot.slane %v296_v22, 1 }
 0x3a1   :  { %v298_v24 = vadd.f32 %v297_v23, %v296_v22 }
 0x3a3   :  { %439 = vpush %v298_v24 }
 0x3d4   :  { %s440_s13 = spop %439 }
 0x3d5   :  { %v300_v25 = vstv %s440_s13 }
 0x3d6   :  { %301 = vst [vmem:[#allocation10] sm:$0xff] %v300_v25 }
 0x3d7   :  { %504 = shalt.err (!%p501_p6)
}
 0x3d8   :  { %s505_s17 = scalar_lea.hbm %s645_s3, 128 }
 0x3d9   :  { %p506_p7 = scmp.ne.s32.totalorder %s645_s3, %s505_s17  ;;  %p509_p8 = scmp.lt.u32.totalorder %s505_s17, %s645_s3 }
 0x3db   :  { %p511_p9 = pnand %p509_p8, %p506_p7 }
 0x3dd   :  { %514 = shalt.err (!%p511_p9)
}
 0x3de   :  { %311 = dma.vmem_to_hbm [thread:$0]  %s309_s12, 128, %s645_s3, [#allocation7]  }
 0x3df   :  { %519 = dma.done.wait [#allocation7], 128  }
 0x3e0   :  { %520 = vsyncadd [#allocation7], 4294967168 }
 0x3e1   :  { %315 = vsyncpa [#allocation6], 1 }
 0x3e2   :  { %316 = vsyncpa [#allocation9], 1 }
 0x3e3   :  { %317 = vsyncpa [#allocation7], 1 }

</bundles_post_ra>
